<compile_context>
chip_gen: v7x
topology: tpu7x:2x2x1
jax: 0.10.0
libtpu: 0.0.40
codegen_flags: <defaults>
</compile_context>

<pallas_src>
import functools

import jax
import jax.numpy as jnp
from jax.experimental import pallas as pl
from jax.experimental.pallas import tpu as pltpu

_VMEM_LIMIT_BYTES = 48 * 1024 * 1024  # above the 16/32 MiB scoped defaults


def _round_up(v, m):
    return (v + m - 1) // m * m


# ----------------------------------------------------------------------------
# Tiled projection matmul (conv-as-matmul for to_q / to_kv).
# ----------------------------------------------------------------------------


def _matmul_kernel(x_ref, w_ref, o_ref, acc_ref):
    @pl.when(pl.program_id(2) == 0)
    def _init():
        acc_ref[...] = jnp.zeros_like(acc_ref)

    acc_ref[...] += jnp.dot(x_ref[...], w_ref[...],
                            preferred_element_type=jnp.float32)

    @pl.when(pl.program_id(2) == pl.num_programs(2) - 1)
    def _store():
        o_ref[...] = acc_ref[...].astype(o_ref.dtype)


def _pallas_linear(x, w, *, out_dtype=None, tm_max=256, tn_max=1024,
                   tk_max=512):
    """(M, K) @ (K, N): bf16 operands, f32 accumulation, pipelined tiles."""
    m, k = x.shape
    k2, n = w.shape
    assert k == k2
    out_dtype = x.dtype if out_dtype is None else out_dtype

    tm = min(_round_up(m, 8), tm_max)
    tn = min(_round_up(n, 128), tn_max)
    tk = k if k <= tk_max else tk_max     # full-K block: no K padding, 1 pass
    mp, np_, kp = _round_up(m, tm), _round_up(n, tn), _round_up(k, tk)

    if (mp, kp) != (m, k):
        x = jnp.pad(x, ((0, mp - m), (0, kp - k)))
    if (kp, np_) != (k, n):
        w = jnp.pad(w, ((0, kp - k), (0, np_ - n)))

    out = pl.pallas_call(
        _matmul_kernel,
        out_shape=jax.ShapeDtypeStruct((mp, np_), out_dtype),
        grid=(mp // tm, np_ // tn, kp // tk),
        in_specs=[pl.BlockSpec((tm, tk), lambda i, j, kk: (i, kk)),
                  pl.BlockSpec((tk, tn), lambda i, j, kk: (kk, j))],
        out_specs=pl.BlockSpec((tm, tn), lambda i, j, kk: (i, j)),
        scratch_shapes=[pltpu.VMEM((tm, tn), jnp.float32)],
        compiler_params=pltpu.CompilerParams(
            dimension_semantics=("parallel", "parallel", "arbitrary"),
            vmem_limit_bytes=_VMEM_LIMIT_BYTES),
    )(x, w)
    if (mp, np_) != (m, n):
        out = out[:m, :n]
    return out


# ----------------------------------------------------------------------------
# Attention core with fused to_out epilogue.
# ----------------------------------------------------------------------------


def _attn_out_kernel(q_ref, k_ref, v_ref, wo_ref, bo_ref, o_ref, acc_ref, *,
                     heads, dim_head, nkv_valid):
    # q_ref : (1, M, TQ, inner)   bf16  (softmax scale folded in)
    # k_ref : (1, M, NKVp, inner) bf16
    # v_ref : (1, M, NKVp, inner) bf16
    # wo_ref: (inner, C) bf16;  bo_ref: (1, C) f32
    # o_ref : (1, TQ, M, C)
    # acc_ref: (M*TQ, inner) f32 lane-dense staging scratch, rows = (z, i)
    _, n_mod, tq, _inner = q_ref.shape
    nkvp = k_ref.shape[2]
    d = dim_head

    # Additive bias masking zero-padded kv positions (j >= nkv_valid).
    if nkvp != nkv_valid:
        j_in_grp = jax.lax.broadcasted_iota(
            jnp.int32, (1, n_mod * nkvp), 1) % nkvp
        col_bias = jnp.where(j_in_grp < nkv_valid, 0.0, -1e9).astype(
            jnp.float32)
    else:
        col_bias = None

    for h in range(heads):
        hs = h * d
        # Stack all modalities along rows (sublane-aligned concats).
        q2 = jnp.concatenate(
            [q_ref[0, m, :, hs:hs + d] for m in range(n_mod)], axis=0)
        k2 = jnp.concatenate(
            [k_ref[0, z, :, hs:hs + d] for z in range(n_mod)], axis=0)

        # One QK^T MXU call per head: rows = (q modality m, position i),
        # columns = (kv modality z, position j).  Scale already folded into q.
        s = jnp.einsum('qd,kd->qk', q2, k2,
                       preferred_element_type=jnp.float32)    # (M*TQ, M*NKVp)
        if col_bias is not None:
            s = s + col_bias

        # Grouped softmax over j (per kv modality z), kept in f32 on VPU/EUP.
        a_groups = []
        for z in range(n_mod):
            s_z = s[:, z * nkvp:(z + 1) * nkvp]               # (M*TQ, NKVp)
            s_z = s_z - jnp.max(s_z, axis=-1, keepdims=True)
            p_z = jnp.exp(s_z)
            a_groups.append(
                p_z * pl.reciprocal(jnp.sum(p_z, axis=-1, keepdims=True),
                                    approx=True))

        # PV: out[i, z, :] = sum_{m, j} attn[m, i, z, j] * v[m, j, :]
        # Per q-modality m: one (M*TQ, NKVp) @ (NKVp, d) matmul whose rows
        # stack all kv modalities z; sum the M partials.
        out_h = None
        for m in range(n_mod):
            a_m = jnp.concatenate(
                [a_groups[z][m * tq:(m + 1) * tq, :] for z in range(n_mod)],
                axis=0).astype(v_ref.dtype)                   # (M*TQ, NKVp)
            part = jnp.dot(a_m, v_ref[0, m, :, hs:hs + d],
                           preferred_element_type=jnp.float32)  # (M*TQ, d)
            out_h = part if out_h is None else out_h + part
        acc_ref[:, hs:hs + d] = out_h

    # Fused to_out Linear(inner -> C) + bias: the (.., inner) intermediate
    # never leaves VMEM; the HBM block writeback is dense.
    y = jnp.dot(acc_ref[...].astype(wo_ref.dtype), wo_ref[...],
                preferred_element_type=jnp.float32)            # (M*TQ, C)
    y = (y + bo_ref[...]).astype(o_ref.dtype)
    for z in range(n_mod):
        o_ref[0, :, z, :] = y[z * tq:(z + 1) * tq, :]


def _pallas_attention_out(q, k, v, w_out, b_out2d, *, heads, dim_head,
                          out_dtype=jnp.float32, tq_max=128):
    """q: (B, M, Nq, inner), k/v: (B, M, NKV, inner) -> (B, Nq, M, C)."""
    B, n_mod, nq, inner = q.shape
    nkv = k.shape[2]
    C = w_out.shape[1]

    # 16-row alignment keeps the in-kernel bf16 row concatenations tile-aligned.
    tq = min(_round_up(nq, 16), tq_max)
    nq_pad = _round_up(nq, tq)
    nkvp = _round_up(nkv, 16)
    if nq_pad != nq:
        q = jnp.pad(q, ((0, 0), (0, 0), (0, nq_pad - nq), (0, 0)))
    if nkvp != nkv:
        pads = ((0, 0), (0, 0), (0, nkvp - nkv), (0, 0))
        k = jnp.pad(k, pads)
        v = jnp.pad(v, pads)

    kernel = functools.partial(_attn_out_kernel, heads=heads,
                               dim_head=dim_head, nkv_valid=nkv)
    out = pl.pallas_call(
        kernel,
        out_shape=jax.ShapeDtypeStruct((B, nq_pad, n_mod, C), out_dtype),
        grid=(B, nq_pad // tq),
        in_specs=[
            pl.BlockSpec((1, n_mod, tq, inner), lambda b, qi: (b, 0, qi, 0)),
            pl.BlockSpec((1, n_mod, nkvp, inner), lambda b, qi: (b, 0, 0, 0)),
            pl.BlockSpec((1, n_mod, nkvp, inner), lambda b, qi: (b, 0, 0, 0)),
            pl.BlockSpec((inner, C), lambda b, qi: (0, 0)),
            pl.BlockSpec((1, C), lambda b, qi: (0, 0)),
        ],
        out_specs=pl.BlockSpec((1, tq, n_mod, C), lambda b, qi: (b, qi, 0, 0)),
        scratch_shapes=[pltpu.VMEM((n_mod * tq, inner), jnp.float32)],
        compiler_params=pltpu.CompilerParams(
            dimension_semantics=("parallel", "parallel"),
            vmem_limit_bytes=_VMEM_LIMIT_BYTES),
    )(q, k, v, w_out, b_out2d)
    if nq_pad != nq:
        out = out[:, :nq]
    return out


# ----------------------------------------------------------------------------
# Conv-as-matmul helper and the module wrapper.
# ----------------------------------------------------------------------------


def _im2col_seq(xt, ksize, stride):
    """xt: (B, M, N, C) -> (B, M, n_out, ksize*C) with reflection pad along N."""
    B, M, N, C = xt.shape
    pad = (ksize - 1) // 2
    xp = jnp.pad(xt, ((0, 0), (0, 0), (pad, pad), (0, 0)), mode='reflect')
    n_out = (N + 2 * pad - ksize) // stride + 1
    taps = [xp[:, :, t:t + stride * (n_out - 1) + 1:stride, :]
            for t in range(ksize)]
    col = jnp.stack(taps, axis=3)                 # (B, M, n_out, ksize, C)
    return col.reshape(B, M, n_out, ksize * C)


class ChannelSeqViProjSmallAttentionPallas:
    """JAX/Pallas port of Channel_Seq_ViProj_Small_Attention (eval, dropout=0)."""

    def __init__(self, query_dim, modalities=8, context_dim=None, heads=8,
                 dim_head=64, *, key):
        inner_dim = heads * dim_head
        self.heads = heads
        self.dim_head = dim_head
        self.modalities = modalities
        self.scale = dim_head ** (-0.5)
        self.query_dim = query_dim

        k1, k2, k3, k4 = jax.random.split(key, 4)
        # Conv weights stored as (ksize, in_ch, out_ch) so the conv is the
        # matmul  im2col(x) @ w.reshape(ksize*in_ch, out_ch).  (bias=False,
        # matching the PyTorch module's Conv2d(..., bias=False).)
        self.w_q = (jax.random.normal(k1, (5, query_dim, inner_dim), jnp.float32)
                    * (5 * query_dim) ** -0.5)
        self.w_kv = (jax.random.normal(k2, (5, query_dim, 2 * inner_dim),
                                       jnp.float32) * (5 * query_dim) ** -0.5)
        self.w_out = (jax.random.normal(k3, (inner_dim, query_dim), jnp.float32)
                      * inner_dim ** -0.5)
        self.b_out = jax.random.normal(k4, (query_dim,), jnp.float32) * 0.01

        # bf16 copies for the MXU fast path (f32 originals kept for reference).
        # Softmax scale folded into the q projection weights.
        self.w_q_bf = (self.w_q * self.scale).reshape(
            5 * query_dim, inner_dim).astype(jnp.bfloat16)
        self.w_kv_bf = self.w_kv.reshape(
            5 * query_dim, 2 * inner_dim).astype(jnp.bfloat16)
        self.w_out_bf = self.w_out.astype(jnp.bfloat16)
        self.b_out_2d = self.b_out.reshape(1, query_dim)

    def __call__(self, x, context=None):
        # x: (B, N, M, query_dim).  mask is not supported (see TODO in header).
        B, N, M, C = x.shape
        h, d = self.heads, self.dim_head
        inner = h * d

        # One cheap layout change so the convolved seq axis is contiguous per
        # modality; bf16 early so the im2col materialization is half-width.
        xt = jnp.transpose(x, (0, 2, 1, 3)).astype(jnp.bfloat16)  # (B, M, N, C)

        # to_q: Conv2d(C, inner, k=(1,5), reflect pad) == im2col @ Wq.
        q_col = _im2col_seq(xt, ksize=5, stride=1)        # (B, M, N, 5C) bf16
        q = _pallas_linear(q_col.reshape(B * M * N, 5 * C), self.w_q_bf)
        q = q.reshape(B, M, N, inner)

        # to_kv: stride-2 conv.  With context == x its im2col rows are exactly
        # the even rows of q's (shares the gather; no second pass over x).
        if context is None:
            kv_col = q_col[:, :, ::2, :]
        else:
            ct = jnp.transpose(context, (0, 2, 1, 3)).astype(jnp.bfloat16)
            kv_col = _im2col_seq(ct, ksize=5, stride=2)
        nkv = kv_col.shape[2]
        kv = _pallas_linear(kv_col.reshape(B * M * nkv, 5 * C), self.w_kv_bf)
        kv = kv.reshape(B, M, nkv, 2 * inner)
        # Split so the per-head k / v slices in-kernel are not offset by
        # `inner` lanes.
        k, v = kv[..., :inner], kv[..., inner:]

        # Attention core + fused to_out (Linear + bias; Dropout(p=0) == id).
        out = _pallas_attention_out(q, k, v, self.w_out_bf, self.b_out_2d,
                                    heads=h, dim_head=d,
                                    out_dtype=jnp.float32)
        return out                                         # (B, N, M, C)


# ----------------------------------------------------------------------------
# Pure-JAX reference (mirrors the PyTorch forward exactly, in f32).
# ----------------------------------------------------------------------------


def _reference(module, x, context=None):
    B, N, M, C = x.shape
    h, d = module.heads, module.dim_head
    inner = h * d
    context = x if context is None else context

    def conv_seq(inp, w, stride):
        xp = jnp.pad(inp, ((0, 0), (2, 2), (0, 0), (0, 0)), mode='reflect')
        n_out = (inp.shape[1] + 4 - 5) // stride + 1
        taps = [xp[:, t:t + stride * (n_out - 1) + 1:stride] for t in range(5)]
        col = jnp.stack(taps, axis=3)             # (B, n_out, M, 5, C)
        return jnp.einsum('bnmtc,tco->bnmo', col, w)

    q = conv_seq(x, module.w_q, 1)                # (B, N, M, inner)
    kv = conv_seq(context, module.w_kv, 2)        # (B, NKV, M, 2*inner)
    k, v = kv[..., :inner], kv[..., inner:]

    def split(t):  # 'b n m (h d) -> (b h) n m d'
        b_, n_, m_, _ = t.shape
        return (t.reshape(b_, n_, m_, h, d)
                 .transpose(0, 3, 1, 2, 4)
                 .reshape(b_ * h, n_, m_, d))

    qh, kh, vh = split(q), split(k), split(v)
    sim = jnp.einsum('bimd,bjzd->bijmz', qh, kh) * module.scale
    attn = jax.nn.softmax(sim, axis=2)            # softmax over j (dim=-3)
    out = jnp.einsum('bijmz,bjmd->bizd', attn, vh)
    out = (out.reshape(B, h, N, M, d)             # '(b h) n m d -> b n m (h d)'
              .transpose(0, 2, 3, 1, 4)
              .reshape(B, N, M, inner))
    return out @ module.w_out + module.b_out


if __name__ == "__main__":
    key = jax.random.PRNGKey(0)
    k_param, k_x = jax.random.split(key)

    # x layout: (batch, seq, modalities, query_dim)
    B, N, M, QUERY_DIM = 2, 8, 4, 32
    HEADS, DIM_HEAD = 4, 16

    module = ChannelSeqViProjSmallAttentionPallas(
        QUERY_DIM, modalities=M, heads=HEADS, dim_head=DIM_HEAD, key=k_param)
    x = jax.random.normal(k_x, (B, N, M, QUERY_DIM), jnp.float32)

    y = jax.block_until_ready(module(x))
    y_ref = _reference(module, x)

    assert y.shape == (B, N, M, QUERY_DIM), y.shape
    rel = float(jnp.linalg.norm(y - y_ref) / jnp.linalg.norm(y_ref))
    max_abs = float(jnp.max(jnp.abs(y - y_ref)))
    # bf16 matmul operands (f32 accumulation) => loosened numerical tolerance.
    assert rel < 5e-2, f"relative error too large: {rel}"
    assert max_abs < 0.25, f"max abs diff too large: {max_abs}"

    print("KERNEL_OK")
</pallas_src>

<mosaic_0001>
module attributes {stable_mosaic.version = 11 : i64} {
  func.func @_matmul_kernel(%arg0: i32, %arg1: i32, %arg2: i32, %arg3: memref<64x160xbf16, #tpu.memory_space<vmem>>, %arg4: memref<160x128xbf16, #tpu.memory_space<vmem>>, %arg5: memref<64x128xbf16, #tpu.memory_space<vmem>>, %arg6: memref<64x128xf32, #tpu.memory_space<vmem>>) attributes {dimension_semantics = [#tpu.dimension_semantics<parallel>, #tpu.dimension_semantics<parallel>, #tpu.dimension_semantics<arbitrary>], iteration_bounds = array<i64: 1, 1, 1>, scalar_prefetch = 0 : i64, scratch_operands = 1 : i64, tpu.core_type = #tpu.core_type<tc>, window_params = [{transform_indices = @transform_0, window_bounds = array<i64: 64, 160>}, {transform_indices = @transform_1, window_bounds = array<i64: 160, 128>}, {transform_indices = @transform_2, window_bounds = array<i64: 64, 128>}]} {
    %c0_i32 = arith.constant 0 : i32
    %0 = arith.cmpi eq, %arg2, %c0_i32 : i32
    %1 = arith.extui %0 : i1 to i32
    %c0_i32_0 = arith.constant 0 : i32
    %2 = arith.cmpi ne, %1, %c0_i32_0 : i32
    scf.if %2 {
      %cst_10 = arith.constant 0.000000e+00 : f32
      %12 = vector.broadcast %cst_10 : f32 to vector<64x128xf32>
      %c0_11 = arith.constant 0 : index
      %c0_12 = arith.constant 0 : index
      %13 = vector.load %arg6[%c0_11, %c0_12] : memref<64x128xf32, #tpu.memory_space<vmem>>, vector<64x128xf32>
      tpu.vector_store %arg6[%c0_11, %c0_12], %12 {strides = array<i32>} : memref<64x128xf32, #tpu.memory_space<vmem>>, vector<64x128xf32>,
    } else {
    }
    %c0 = arith.constant 0 : index
    %c0_1 = arith.constant 0 : index
    %3 = vector.load %arg6[%c0, %c0_1] : memref<64x128xf32, #tpu.memory_space<vmem>>, vector<64x128xf32>
    %c0_2 = arith.constant 0 : index
    %c0_3 = arith.constant 0 : index
    %4 = vector.load %arg3[%c0_2, %c0_3] : memref<64x160xbf16, #tpu.memory_space<vmem>>, vector<64x160xbf16>
    %c0_4 = arith.constant 0 : index
    %c0_5 = arith.constant 0 : index
    %5 = vector.load %arg4[%c0_4, %c0_5] : memref<160x128xbf16, #tpu.memory_space<vmem>>, vector<160x128xbf16>
    %cst = arith.constant dense<0.000000e+00> : vector<64x128xf32>
    %6 = tpu.matmul %4, %5, %cst {dimension_numbers = #tpu.dot_dimension_numbers<[1], [0], [0], [1], [0, 0, 1, 1], [], []>} : vector<64x160xbf16>, vector<160x128xbf16>, vector<64x128xf32> -> vector<64x128xf32>
    %7 = arith.addf %3, %6 : vector<64x128xf32>
    %c0_6 = arith.constant 0 : index
    %c0_7 = arith.constant 0 : index
    %8 = vector.load %arg6[%c0_6, %c0_7] : memref<64x128xf32, #tpu.memory_space<vmem>>, vector<64x128xf32>
    tpu.vector_store %arg6[%c0_6, %c0_7], %7 {strides = array<i32>} : memref<64x128xf32, #tpu.memory_space<vmem>>, vector<64x128xf32>,
    %c0_i32_8 = arith.constant 0 : i32
    %9 = arith.cmpi eq, %arg2, %c0_i32_8 : i32
    %10 = arith.extui %9 : i1 to i32
    %c0_i32_9 = arith.constant 0 : i32
    %11 = arith.cmpi ne, %10, %c0_i32_9 : i32
    scf.if %11 {
      %c0_10 = arith.constant 0 : index
      %c0_11 = arith.constant 0 : index
      %12 = vector.load %arg6[%c0_10, %c0_11] : memref<64x128xf32, #tpu.memory_space<vmem>>, vector<64x128xf32>
      %13 = arith.truncf %12 : vector<64x128xf32> to vector<64x128xbf16>
      %c0_12 = arith.constant 0 : index
      %c0_13 = arith.constant 0 : index
      %14 = vector.load %arg5[%c0_12, %c0_13] : memref<64x128xbf16, #tpu.memory_space<vmem>>, vector<64x128xbf16>
      tpu.vector_store %arg5[%c0_12, %c0_13], %13 {strides = array<i32>} : memref<64x128xbf16, #tpu.memory_space<vmem>>, vector<64x128xbf16>,
    } else {
    }
    return
  }
  func.func @transform_0(%arg0: i32, %arg1: i32, %arg2: i32) -> (i32, i32) {
    %c0_i32 = arith.constant 0 : i32
    return %arg0, %arg2 : i32, i32
  }
  func.func @transform_1(%arg0: i32, %arg1: i32, %arg2: i32) -> (i32, i32) {
    %c0_i32 = arith.constant 0 : i32
    return %arg2, %arg1 : i32, i32
  }
  func.func @transform_2(%arg0: i32, %arg1: i32, %arg2: i32) -> (i32, i32) {
    %c0_i32 = arith.constant 0 : i32
    return %arg0, %arg1 : i32, i32
  }
}

</mosaic_0001>

<bundles_post_ra>
// kernel: tpu_custom_call.1
= control target key start
LH: loop header
LB: loop body
LE: loop exit
PB: predicated region body
PF: predicated region fallthrough
CT: control target
= control target key end

     0   :  { %7 = vsyncpa [#allocation4], 0  ;;  %s600_s0 = inlined_call_operand.hbm [shape: bf16[64,160], index: 0, kind: input, shape index: {}]   ;;  %s601_s1 = inlined_call_operand.hbm [shape: bf16[160,128], index: 1, kind: input, shape index: {}]   ;;  %s602_s2 = inlined_call_operand.hbm [shape: bf16[64,128], index: 2, kind: output, shape index: {}]  }
   0x1   :  { %8 = vsyncpa [#allocation7], 0 }
   0x2   :  { %9 = vsyncpa [#allocation5], 0  ;;  %s531_s9 = smov [#allocation3]   ;;  %s459_s13 = scalar_lea.hbm %s600_s0, 1024 }
   0x3   :  { %s15_s10 = sshll.u32 %s531_s9, 4  ;;  %p460_p0 = scmp.ne.s32.totalorder %s600_s0, %s459_s13  ;;  %s16_s10 = int_to_ptr.vmem [resolvable:$true] %s15_s10 }
   0x4   :  { %p463_p1 = scmp.lt.u32.totalorder %s459_s13, %s600_s0 }
   0x6   :  { %p465_p2 = pnand %p463_p1, %p460_p0 }
   0x8   :  { %468 = shalt.err (!%p465_p2)
}
   0x9   :  { %s469_s18 = scalar_lea.vmem %s16_s10, 1024  ;;  %p474_p4 = scmp.lt.s32.totalorder %s16_s10, %s16_s10 }
   0xa   :  { %p470_p3 = scmp.ne.s32.totalorder %s16_s10, %s469_s18  ;;  %p475_p5 = scmp.lt.s32.totalorder %s469_s18, %s469_s18 }
   0xc   :  { %p476_p6 = por %p475_p5, %p474_p4 }
   0xe   :  { %p477_p7 = pnand %p476_p6, %p470_p3 }
  0x10   :  { %480 = shalt.err (!%p477_p7)
}
  0x11   :  { %s532_s19 = smov 128   ;;  %s533_s20 = smov 8  }
  0x12   :  { %21 = dma.hbm_to_vmem [thread:$0]  %s600_s0, 1024, %s16_s10, [#allocation4], %s532_s19, %s532_s19, %s533_s20  }
  0x13   :  { %s534_s23 = smov [#allocation6]   ;;  %s481_s27 = scalar_lea.hbm %s601_s1, 1280 }
  0x14   :  { %s27_s24 = sshll.u32 %s534_s23, 4  ;;  %p482_p8 = scmp.ne.s32.totalorder %s601_s1, %s481_s27  ;;  %s28_s24 = int_to_ptr.vmem [resolvable:$true] %s27_s24 }
  0x15   :  { %p485_p9 = scmp.lt.u32.totalorder %s481_s27, %s601_s1 }
  0x17   :  { %p487_p10 = pnand %p485_p9, %p482_p8 }
  0x19   :  { %490 = shalt.err (!%p487_p10)
}
  0x1a   :  { %s491_s4 = scalar_lea.vmem %s28_s24, 1280  ;;  %p496_p12 = scmp.lt.s32.totalorder %s28_s24, %s28_s24 }
  0x1b   :  { %p492_p11 = scmp.ne.s32.totalorder %s28_s24, %s491_s4  ;;  %p497_p13 = scmp.lt.s32.totalorder %s491_s4, %s491_s4 }
  0x1d   :  { %p498_p0 = por %p497_p13, %p496_p12 }
  0x1f   :  { %p499_p1 = pnand %p498_p0, %p492_p11 }
  0x21   :  { %502 = shalt.err (!%p499_p1)
}
  0x22   :  { %s535_s0 = smov 64   ;;  %s536_s5 = smov 4  }
  0x23   :  { %33 = dma.hbm_to_vmem [thread:$0]  %s601_s1, 1280, %s28_s24, [#allocation7], %s535_s0, %s535_s0, %s536_s5  }
  0x24   :  { %525 = dma.done.wait [#allocation4], 1024  }
  0x25   :  { %526 = vsyncadd [#allocation4], 4294966272 }
  0x26   :  { %527 = dma.done.wait [#allocation7], 1280  }
  0x27   :  { %528 = vsyncadd [#allocation7], 4294966016  ;;  %v537_v0 = vmov 0   ;;  %v437_v1 = vld [vmem:[#allocation6] sm:$0xff]   ;;  %v438_v2 = vld [vmem:[#allocation6 + $0x8] sm:$0xff]   ;;  %vm185_vm0 = vcmask 261120  }
  0x28   :  { %198 = vmatprep.subr.bf16.mxu0 %v537_v0  ;;  %409 = vmatprep.subr.bf16.mxu1 %v537_v0  ;;  %v439_v3 = vld [vmem:[#allocation6 + $0x10] sm:$0xff]   ;;  %v440_v4 = vld [vmem:[#allocation6 + $0x18] sm:$0xff]   ;;  %v449_v5 = vld [vmem:[#allocation3 + $0x4] ss:$8 sps:$4 sm:$0xff]   ;;  %s538_s1 = smov [#allocation8]  }
  0x29   :  { %199 = vmatpush1.bf16.msra.mxu0 %v437_v1  ;;  %419 = vmatpush1.bf16.msra.mxu1 %v437_v1  ;;  %v452_v6 = vld [vmem:[#allocation3 + $0x24] ss:$8 sps:$4 sm:$0xff]   ;;  %v443_v9 = vld [vmem:[#allocation6 + $0x30] sm:$0xff]   ;;  %v444_v10 = vld [vmem:[#allocation6 + $0x38] sm:$0xff]   ;;  %s335_s8 = sshll.u32 %s538_s1, 4  ;;  %s336_s8 = int_to_ptr.vmem [resolvable:$true] %s335_s8 }
  0x2a   :  { %200 = vmatprep.subr.bf16.mxu0 %v537_v0  ;;  %410 = vmatprep.subr.bf16.mxu1 %v537_v0  ;;  %v441_v7 = vld [vmem:[#allocation6 + $0x20] sm:$0xff]   ;;  %v442_v8 = vld [vmem:[#allocation6 + $0x28] sm:$0xff]   ;;  %v453_v15 = vld [vmem:[#allocation3 + $0x14] ss:$8 sps:$4 sm:$0xff]   ;;  %s503_s9 = scalar_lea.vmem %s336_s8, 512  ;;  %p508_p3 = scmp.lt.s32.totalorder %s336_s8, %s336_s8 }
  0x2b   :  { %366 = vmatprep.mubr.msk.bf16.mxu0 %vm185_vm0, %v449_v5  ;;  %368 = vmatprep.mubr.msk.bf16.mxu1 %vm185_vm0, %v452_v6  ;;  %v445_v11 = vld [vmem:[#allocation6 + $0x40] sm:$0xff]   ;;  %v446_v12 = vld [vmem:[#allocation6 + $0x48] sm:$0xff]   ;;  %v455_v16 = vld [vmem:[#allocation3 + $0x34] ss:$8 sps:$4 sm:$0xff]   ;;  %p504_p2 = scmp.ne.s32.totalorder %s336_s8, %s503_s9  ;;  %p509_p4 = scmp.lt.s32.totalorder %s503_s9, %s503_s9 }
  0x2c   :  { %v447_v13 = vld [vmem:[#allocation3] ss:$8 sps:$4 sm:$0xff]   ;;  %v457_v17 = vld [vmem:[#allocation3 + $0x10] ss:$8 sps:$4 sm:$0xff]  }
  0x2d   :  { %201 = vmatpush1.bf16.msra.mxu0 %v438_v2  ;;  %420 = vmatpush1.bf16.msra.mxu1 %v438_v2  ;;  %v450_v14 = vld [vmem:[#allocation3 + $0x20] ss:$8 sps:$4 sm:$0xff]   ;;  %v458_v18 = vld [vmem:[#allocation3 + $0x30] ss:$8 sps:$4 sm:$0xff]   ;;  %p510_p5 = por %p509_p4, %p508_p3 }
  0x2e   :  { %202 = vmatprep.subr.bf16.mxu0 %v537_v0  ;;  %411 = vmatprep.subr.bf16.mxu1 %v537_v0 }
  0x2f   :  { %p511_p6 = pnand %p510_p5, %p504_p2 }
  0x31   :  { %203 = vmatpush1.bf16.msra.mxu0 %v439_v3  ;;  %421 = vmatpush1.bf16.msra.mxu1 %v439_v3 }
  0x32   :  { %204 = vmatprep.subr.bf16.mxu0 %v537_v0  ;;  %412 = vmatprep.subr.bf16.mxu1 %v537_v0 }
  0x35   :  { %205 = vmatpush1.bf16.msra.mxu0 %v440_v4  ;;  %422 = vmatpush1.bf16.msra.mxu1 %v440_v4 }
  0x36   :  { %206 = vmatprep.subr.bf16.mxu0 %v537_v0  ;;  %413 = vmatprep.subr.bf16.mxu1 %v537_v0 }
  0x39   :  { %207 = vmatpush1.bf16.msra.mxu0 %v441_v7  ;;  %423 = vmatpush1.bf16.msra.mxu1 %v441_v7 }
  0x3a   :  { %208 = vmatprep.subr.bf16.mxu0 %v537_v0  ;;  %414 = vmatprep.subr.bf16.mxu1 %v537_v0 }
  0x3d   :  { %209 = vmatpush1.bf16.msra.mxu0 %v442_v8  ;;  %424 = vmatpush1.bf16.msra.mxu1 %v442_v8 }
  0x3e   :  { %210 = vmatprep.subr.bf16.mxu0 %v537_v0  ;;  %415 = vmatprep.subr.bf16.mxu1 %v537_v0 }
  0x41   :  { %211 = vmatpush1.bf16.msra.mxu0 %v443_v9  ;;  %425 = vmatpush1.bf16.msra.mxu1 %v443_v9 }
  0x42   :  { %212 = vmatprep.subr.bf16.mxu0 %v537_v0  ;;  %416 = vmatprep.subr.bf16.mxu1 %v537_v0 }
  0x45   :  { %213 = vmatpush1.bf16.msra.mxu0 %v444_v10  ;;  %426 = vmatpush1.bf16.msra.mxu1 %v444_v10 }
  0x46   :  { %214 = vmatprep.subr.bf16.mxu0 %v537_v0  ;;  %417 = vmatprep.subr.bf16.mxu1 %v537_v0 }
  0x49   :  { %215 = vmatpush1.bf16.msra.mxu0 %v445_v11  ;;  %427 = vmatpush1.bf16.msra.mxu1 %v445_v11 }
  0x4a   :  { %216 = vmatprep.subr.bf16.mxu0 %v537_v0  ;;  %418 = vmatprep.subr.bf16.mxu1 %v537_v0 }
  0x4d   :  { %217 = vmatpush1.bf16.msra.mxu0 %v446_v12  ;;  %428 = vmatpush1.bf16.msra.mxu1 %v446_v12 }
  0x50   :  { %231 = vmatmul.mubr.bf16.vlgmr.msra.gmra.mrb[0].mxu0 %v447_v13  ;;  %247 = vmatmul.mubr.bf16.vlgmr.msra.gmra.mrb[0].mxu1 %v450_v14 }
  0x51   :  { %367 = vmatprep.mubr.msk.bf16.mxu0 %vm185_vm0, %v453_v15  ;;  %369 = vmatprep.mubr.msk.bf16.mxu1 %vm185_vm0, %v455_v16 }
  0x58   :  { %239 = vmatmul.mubr.bf16.gmra.mrb[4].mxu0 %v457_v17  ;;  %255 = vmatmul.mubr.bf16.gmra.mrb[4].mxu1 %v458_v18 }
 0x123   :  { %v232_v19 = vpop.f32.mrb[0].mxu0  ;;  %v248_v20 = vpop.f32.mrb[0].mxu1 }
 0x124   :  { %v234_v21 = vpop.f32.mrb[1].mxu0  ;;  %v250_v22 = vpop.f32.mrb[1].mxu1 }
 0x125   :  { %v235_v23 = vpop.f32.mrb[2].mxu0  ;;  %v251_v24 = vpop.f32.mrb[2].mxu1 }
 0x126   :  { %v389_v25 = vpack.c.bf16 %v235_v23, %v232_v19  ;;  %v399_v26 = vpack.c.bf16 %v251_v24, %v248_v20  ;;  %v237_v27 = vpop.f32.mrb[3].mxu0  ;;  %v253_v28 = vpop.f32.mrb[3].mxu1 }
 0x128   :  { %390 = vst [vmem:[#allocation8] sm:$0xff] %v389_v25   ;;  %407 = vst [vmem:[#allocation8 + $0x10] sm:$0xff] %v399_v26  }
 0x12b   :  { %v240_v29 = vpop.f32.mrb[4].mxu0  ;;  %v256_v30 = vpop.f32.mrb[4].mxu1 }
 0x12c   :  { %v242_v31 = vpop.f32.mrb[5].mxu0  ;;  %v258_v32 = vpop.f32.mrb[5].mxu1 }
 0x12d   :  { %v243_v33 = vpop.f32.mrb[6].mxu0  ;;  %v259_v34 = vpop.f32.mrb[6].mxu1 }
 0x12e   :  { %v394_v35 = vpack.c.bf16 %v243_v33, %v240_v29  ;;  %v404_v36 = vpack.c.bf16 %v259_v34, %v256_v30  ;;  %v245_v37 = vpop.f32.mrb[7].mxu0  ;;  %v261_v38 = vpop.f32.mrb[7].mxu1 }
 0x130   :  { %406 = vst [vmem:[#allocation8 + $0x8] sm:$0xff] %v394_v35   ;;  %408 = vst [vmem:[#allocation8 + $0x18] sm:$0xff] %v404_v36  }
 0x131   :  { %514 = shalt.err (!%p511_p6)
}
 0x132   :  { %s515_s12 = scalar_lea.hbm %s602_s2, 512 }
 0x133   :  { %p516_p7 = scmp.ne.s32.totalorder %s602_s2, %s515_s12  ;;  %p519_p8 = scmp.lt.u32.totalorder %s515_s12, %s602_s2 }
 0x135   :  { %p521_p9 = pnand %p519_p8, %p516_p7 }
 0x137   :  { %524 = shalt.err (!%p521_p9)
}
 0x138   :  { %341 = dma.vmem_to_hbm [thread:$0]  %s336_s8, 512, %s602_s2, [#allocation5], %s535_s0, %s535_s0, %s536_s5  }
 0x139   :  { %529 = dma.done.wait [#allocation5], 512  }
 0x13a   :  { %530 = vsyncadd [#allocation5], 4294966784 }
 0x13b   :  { %345 = vsyncpa [#allocation4], 1 }
 0x13c   :  { %346 = vsyncpa [#allocation7], 1 }
 0x13d   :  { %347 = vsyncpa [#allocation5], 1 }

</bundles_post_ra>
